<compile_context>
chip_gen: v7x
topology: tpu7x:2x2x1
jax: 0.10.0
libtpu: 0.0.40
codegen_flags: <defaults>
</compile_context>

<pallas_src>
import jax
import jax.numpy as jnp
from jax import lax
from jax.experimental import pallas as pl
from jax.experimental.pallas import tpu as pltpu

IN_FEATURES = 32     # LazyLinear infers this from the first input; fixed here.
HID1 = 512
HID2 = 256
OUT = 1
MAX_TILE_B = 512     # MXU M-dim aligned batch tile for large batches.


def v_network_kernel(x_ref, w1_ref, b1_ref, w2_ref, b2_ref, w3_ref, b3_ref, o_ref):
    # fc1 + relu : (TILE_B, IN) @ (IN, H1) on the MXU, bf16 operands, f32 acc.
    h1 = jnp.dot(x_ref[...], w1_ref[...], preferred_element_type=jnp.float32)
    h1 = jnp.maximum(h1 + b1_ref[...], 0.0)                      # f32 VPU
    # fc2 + relu
    h2 = jnp.dot(h1.astype(jnp.bfloat16), w2_ref[...],
                 preferred_element_type=jnp.float32)
    h2 = jnp.maximum(h2 + b2_ref[...], 0.0)                      # f32 VPU
    # fc3, emitted lane-dense: contract (1, H2) with (TILE_B, H2) over the
    # feature axis -> (1, TILE_B).  No (TILE_B, 1) column output, no in-kernel
    # transpose, no masked partial stores.
    o = lax.dot_general(
        w3_ref[...], h2.astype(jnp.bfloat16),
        dimension_numbers=(((1,), (1,)), ((), ())),
        preferred_element_type=jnp.float32)
    o_ref[...] = (o + b3_ref[...]).astype(o_ref.dtype)


def _round_up(n, m):
    return ((n + m - 1) // m) * m


@jax.jit
def v_network_forward(x, params):
    w1, b1, w2, b2, w3, b3 = params
    B = x.shape[0]

    # Adaptive batch tiling: single sublane-aligned tile for small batches,
    # 512-row MXU-aligned tiles (multiple of 128 lanes in the output) for
    # large batches.
    if B <= MAX_TILE_B:
        tile_b = max(8, _round_up(B, 8))
    else:
        tile_b = MAX_TILE_B
    n_tiles = pl.cdiv(B, tile_b)
    b_pad = n_tiles * tile_b

    xb = x.astype(jnp.bfloat16)
    if b_pad != B:
        xb = jnp.pad(xb, ((0, b_pad - B), (0, 0)))   # pad rows sliced off below

    const = lambda shape: pl.BlockSpec(shape, lambda i: (0, 0))   # VMEM-resident

    flops = 2 * b_pad * (IN_FEATURES * HID1 + HID1 * HID2 + HID2 * OUT)
    bytes_accessed = (
        b_pad * IN_FEATURES * 2 + b_pad * OUT * 4
        + (IN_FEATURES * HID1 + HID1 * HID2 + HID2 * OUT) * 2
        + (HID1 + HID2 + OUT) * 4)

    out = pl.pallas_call(
        v_network_kernel,
        out_shape=jax.ShapeDtypeStruct((1, b_pad), jnp.float32),
        grid=(n_tiles,),
        in_specs=[
            pl.BlockSpec((tile_b, IN_FEATURES), lambda i: (i, 0)),   # x tile
            const(w1.shape), const(b1.shape),
            const(w2.shape), const(b2.shape),
            const(w3.shape), const(b3.shape),
        ],
        out_specs=pl.BlockSpec((1, tile_b), lambda i: (0, i)),       # lane-dense
        compiler_params=pltpu.CompilerParams(
            dimension_semantics=("parallel",),
            vmem_limit_bytes=16 << 20),
        cost_estimate=pl.CostEstimate(
            flops=flops, transcendentals=0, bytes_accessed=bytes_accessed),
    )(xb, w1, b1, w2, b2, w3, b3)

    # (1, B_pad) lane-dense kernel output -> (B, 1) like torch; drop pad rows.
    return out[0, :B].reshape(B, OUT)


def init_params(key):
    """Torch-like nn.Linear init (uniform +/- 1/sqrt(fan_in)).

    Weights are stored transposed vs. torch, i.e. (D_in, D_out), in bf16 (MXU
    operand dtype).  Biases stay f32.  fc3 weight is kept in row form (1, HID2)
    for the lane-dense contraction.
    """
    ks = jax.random.split(key, 6)

    def linear(kw, kb, fan_in, fan_out):
        bound = 1.0 / jnp.sqrt(float(fan_in))
        w = jax.random.uniform(kw, (fan_in, fan_out), jnp.float32, -bound, bound)
        b = jax.random.uniform(kb, (1, fan_out), jnp.float32, -bound, bound)
        return w, b

    w1, b1 = linear(ks[0], ks[1], IN_FEATURES, HID1)
    w2, b2 = linear(ks[2], ks[3], HID1, HID2)
    w3, b3 = linear(ks[4], ks[5], HID2, OUT)
    return (w1.astype(jnp.bfloat16), b1,
            w2.astype(jnp.bfloat16), b2,
            w3.T.astype(jnp.bfloat16), b3)


def reference_forward(x, params):
    """Pure-JAX reference mirroring the kernel's bf16 operand quantization."""
    w1, b1, w2, b2, w3, b3 = params
    f32 = lambda a: a.astype(jnp.float32)
    xq = f32(x.astype(jnp.bfloat16))
    h1 = jnp.maximum(xq @ f32(w1) + b1, 0.0)
    h2 = jnp.maximum(f32(h1.astype(jnp.bfloat16)) @ f32(w2) + b2, 0.0)
    return f32(h2.astype(jnp.bfloat16)) @ f32(w3).T + b3


if __name__ == "__main__":
    key = jax.random.PRNGKey(0)
    kx, kx2, kp = jax.random.split(key, 3)
    params = init_params(kp)

    # Small batch (single-tile path).
    B = 2
    x = jax.random.normal(kx, (B, IN_FEATURES), jnp.float32)
    out = jax.block_until_ready(v_network_forward(x, params))
    ref = reference_forward(x, params)
    assert out.shape == (B, OUT), out.shape
    assert jnp.allclose(out, ref, atol=2e-2, rtol=2e-2), (out, ref)

    # Larger batch (multi-tile pipelined path).
    B2 = 600
    x2 = jax.random.normal(kx2, (B2, IN_FEATURES), jnp.float32)
    out2 = jax.block_until_ready(v_network_forward(x2, params))
    ref2 = reference_forward(x2, params)
    assert out2.shape == (B2, OUT), out2.shape
    assert jnp.allclose(out2, ref2, atol=2e-2, rtol=2e-2)

    print("KERNEL_OK")
</pallas_src>

<mosaic_0001>
module attributes {stable_mosaic.version = 11 : i64} {
  func.func @v_network_kernel(%arg0: i32, %arg1: memref<8x32xbf16, #tpu.memory_space<vmem>>, %arg2: memref<32x512xbf16, #tpu.memory_space<vmem>>, %arg3: memref<1x512xf32, #tpu.memory_space<vmem>>, %arg4: memref<512x256xbf16, #tpu.memory_space<vmem>>, %arg5: memref<1x256xf32, #tpu.memory_space<vmem>>, %arg6: memref<1x256xbf16, #tpu.memory_space<vmem>>, %arg7: memref<1x1xf32, #tpu.memory_space<vmem>>, %arg8: memref<1x8xf32, #tpu.memory_space<vmem>>) attributes {dimension_semantics = [#tpu.dimension_semantics<parallel>], iteration_bounds = array<i64: 1>, scalar_prefetch = 0 : i64, scratch_operands = 0 : i64, tpu.core_type = #tpu.core_type<tc>, window_params = [{transform_indices = @transform_0, window_bounds = array<i64: 8, 32>}, {pipeline_mode = #tpu.pipeline_mode<synchronous>, transform_indices = @transform_1, window_bounds = array<i64: 32, 512>}, {pipeline_mode = #tpu.pipeline_mode<synchronous>, transform_indices = @transform_2, window_bounds = array<i64: 1, 512>}, {pipeline_mode = #tpu.pipeline_mode<synchronous>, transform_indices = @transform_3, window_bounds = array<i64: 512, 256>}, {pipeline_mode = #tpu.pipeline_mode<synchronous>, transform_indices = @transform_4, window_bounds = array<i64: 1, 256>}, {pipeline_mode = #tpu.pipeline_mode<synchronous>, transform_indices = @transform_5, window_bounds = array<i64: 1, 256>}, {pipeline_mode = #tpu.pipeline_mode<synchronous>, transform_indices = @transform_6, window_bounds = array<i64: 1, 1>}, {transform_indices = @transform_7, window_bounds = array<i64: 1, 8>}]} {
    %c0 = arith.constant 0 : index
    %c0_0 = arith.constant 0 : index
    %0 = vector.load %arg1[%c0, %c0_0] : memref<8x32xbf16, #tpu.memory_space<vmem>>, vector<8x32xbf16>
    %c0_1 = arith.constant 0 : index
    %c0_2 = arith.constant 0 : index
    %1 = vector.load %arg2[%c0_1, %c0_2] : memref<32x512xbf16, #tpu.memory_space<vmem>>, vector<32x512xbf16>
    %cst = arith.constant dense<0.000000e+00> : vector<8x512xf32>
    %2 = tpu.matmul %0, %1, %cst {dimension_numbers = #tpu.dot_dimension_numbers<[1], [0], [0], [1], [0, 0, 1, 1], [], []>} : vector<8x32xbf16>, vector<32x512xbf16>, vector<8x512xf32> -> vector<8x512xf32>
    %c0_3 = arith.constant 0 : index
    %c0_4 = arith.constant 0 : index
    %3 = vector.load %arg3[%c0_3, %c0_4] : memref<1x512xf32, #tpu.memory_space<vmem>>, vector<1x512xf32>
    %4 = vector.broadcast %3 : vector<1x512xf32> to vector<8x512xf32>
    %5 = arith.addf %2, %4 : vector<8x512xf32>
    %cst_5 = arith.constant 0.000000e+00 : f32
    %6 = vector.broadcast %cst_5 : f32 to vector<8x512xf32>
    %7 = arith.maximumf %5, %6 : vector<8x512xf32>
    %8 = arith.truncf %7 : vector<8x512xf32> to vector<8x512xbf16>
    %c0_6 = arith.constant 0 : index
    %c0_7 = arith.constant 0 : index
    %9 = vector.load %arg4[%c0_6, %c0_7] : memref<512x256xbf16, #tpu.memory_space<vmem>>, vector<512x256xbf16>
    %cst_8 = arith.constant dense<0.000000e+00> : vector<8x256xf32>
    %10 = tpu.matmul %8, %9, %cst_8 {dimension_numbers = #tpu.dot_dimension_numbers<[1], [0], [0], [1], [0, 0, 1, 1], [], []>} : vector<8x512xbf16>, vector<512x256xbf16>, vector<8x256xf32> -> vector<8x256xf32>
    %c0_9 = arith.constant 0 : index
    %c0_10 = arith.constant 0 : index
    %11 = vector.load %arg5[%c0_9, %c0_10] : memref<1x256xf32, #tpu.memory_space<vmem>>, vector<1x256xf32>
    %12 = vector.broadcast %11 : vector<1x256xf32> to vector<8x256xf32>
    %13 = arith.addf %10, %12 : vector<8x256xf32>
    %cst_11 = arith.constant 0.000000e+00 : f32
    %14 = vector.broadcast %cst_11 : f32 to vector<8x256xf32>
    %15 = arith.maximumf %13, %14 : vector<8x256xf32>
    %c0_12 = arith.constant 0 : index
    %c0_13 = arith.constant 0 : index
    %16 = vector.load %arg6[%c0_12, %c0_13] : memref<1x256xbf16, #tpu.memory_space<vmem>>, vector<1x256xbf16>
    %17 = arith.truncf %15 : vector<8x256xf32> to vector<8x256xbf16>
    %cst_14 = arith.constant dense<0.000000e+00> : vector<1x8xf32>
    %18 = tpu.matmul %16, %17, %cst_14 {dimension_numbers = #tpu.dot_dimension_numbers<[1], [1], [0], [0], [0, 0, 1, 0], [], []>} : vector<1x256xbf16>, vector<8x256xbf16>, vector<1x8xf32> -> vector<1x8xf32>
    %c0_15 = arith.constant 0 : index
    %c0_16 = arith.constant 0 : index
    %19 = vector.load %arg7[%c0_15, %c0_16] : memref<1x1xf32, #tpu.memory_space<vmem>>, vector<1x1xf32>
    %20 = vector.broadcast %19 : vector<1x1xf32> to vector<1x8xf32>
    %21 = arith.addf %18, %20 : vector<1x8xf32>
    %c0_17 = arith.constant 0 : index
    %c0_18 = arith.constant 0 : index
    %22 = vector.load %arg8[%c0_17, %c0_18] : memref<1x8xf32, #tpu.memory_space<vmem>>, vector<1x8xf32>
    tpu.vector_store %arg8[%c0_17, %c0_18], %21 {strides = array<i32>} : memref<1x8xf32, #tpu.memory_space<vmem>>, vector<1x8xf32>,
    return
  }
  func.func @transform_0(%arg0: i32) -> (i32, i32) {
    %c0_i32 = arith.constant 0 : i32
    %c0_i32_0 = arith.constant 0 : i32
    return %arg0, %c0_i32 : i32, i32
  }
  func.func @transform_1(%arg0: i32) -> (i32, i32) {
    %c0_i32 = arith.constant 0 : i32
    %c0_i32_0 = arith.constant 0 : i32
    %c0_i32_1 = arith.constant 0 : i32
    return %c0_i32, %c0_i32_0 : i32, i32
  }
  func.func @transform_2(%arg0: i32) -> (i32, i32) {
    %c0_i32 = arith.constant 0 : i32
    %c0_i32_0 = arith.constant 0 : i32
    %c0_i32_1 = arith.constant 0 : i32
    return %c0_i32, %c0_i32_0 : i32, i32
  }
  func.func @transform_3(%arg0: i32) -> (i32, i32) {
    %c0_i32 = arith.constant 0 : i32
    %c0_i32_0 = arith.constant 0 : i32
    %c0_i32_1 = arith.constant 0 : i32
    return %c0_i32, %c0_i32_0 : i32, i32
  }
  func.func @transform_4(%arg0: i32) -> (i32, i32) {
    %c0_i32 = arith.constant 0 : i32
    %c0_i32_0 = arith.constant 0 : i32
    %c0_i32_1 = arith.constant 0 : i32
    return %c0_i32, %c0_i32_0 : i32, i32
  }
  func.func @transform_5(%arg0: i32) -> (i32, i32) {
    %c0_i32 = arith.constant 0 : i32
    %c0_i32_0 = arith.constant 0 : i32
    %c0_i32_1 = arith.constant 0 : i32
    return %c0_i32, %c0_i32_0 : i32, i32
  }
  func.func @transform_6(%arg0: i32) -> (i32, i32) {
    %c0_i32 = arith.constant 0 : i32
    %c0_i32_0 = arith.constant 0 : i32
    %c0_i32_1 = arith.constant 0 : i32
    return %c0_i32, %c0_i32_0 : i32, i32
  }
  func.func @transform_7(%arg0: i32) -> (i32, i32) {
    %c0_i32 = arith.constant 0 : i32
    %c0_i32_0 = arith.constant 0 : i32
    return %c0_i32, %arg0 : i32, i32
  }
}

</mosaic_0001>

<bundles_post_ra>
// kernel: v_network_forward.1
= control target key start
LH: loop header
LB: loop body
LE: loop exit
PB: predicated region body
PF: predicated region fallthrough
CT: control target
= control target key end

     0   :  { %s1127_s0 = inlined_call_operand.vmem [shape: bf16[8,32], index: 0, kind: input, shape index: {}]   ;;  %s1128_s1 = inlined_call_operand.hbm [shape: bf16[32,512], index: 1, kind: input, shape index: {}]   ;;  %s1129_s2 = inlined_call_operand.vmem [shape: f32[1,512], index: 2, kind: input, shape index: {}]   ;;  %s1130_s3 = inlined_call_operand.hbm [shape: bf16[512,256], index: 3, kind: input, shape index: {}]   ;;  %s1131_s4 = inlined_call_operand.vmem [shape: f32[1,256], index: 4, kind: input, shape index: {}]   ;;  %s1132_s5 = inlined_call_operand.vmem [shape: bf16[1,256], index: 5, kind: input, shape index: {}]   ;;  %s1133_s6 = inlined_call_operand.<no memory space> [shape: f32[1,1], index: 6, kind: input, shape index: {}]   ;;  %s1134_s7 = inlined_call_operand.vmem [shape: f32[1,8], index: 7, kind: output, shape index: {}]  }
   0x1   :  { %v12_v0 = vstv %s1133_s6 }
   0x2   :  { %13 = vst [vmem:[#allocation2] sm:$0x1] %v12_v0 }
   0x3   :  { %14 = vsyncpa [#allocation4], 0 }
   0x4   :  { %15 = vsyncpa [#allocation6], 0  ;;  %s1032_s26 = smov [#allocation3]   ;;  %s984_s30 = scalar_lea.hbm %s1128_s1, 1024 }
   0x5   :  { %s23_s27 = sshll.u32 %s1032_s26, 4  ;;  %p985_p0 = scmp.ne.s32.totalorder %s1128_s1, %s984_s30  ;;  %s24_s27 = int_to_ptr.vmem [resolvable:$true] %s23_s27 }
   0x6   :  { %p988_p1 = scmp.lt.u32.totalorder %s984_s30, %s1128_s1 }
   0x8   :  { %p990_p2 = pnand %p988_p1, %p985_p0 }
   0xa   :  { %993 = shalt.err (!%p990_p2)
}
   0xb   :  { %s994_s6 = scalar_lea.vmem %s24_s27, 1024  ;;  %p999_p4 = scmp.lt.s32.totalorder %s24_s27, %s24_s27 }
   0xc   :  { %p995_p3 = scmp.ne.s32.totalorder %s24_s27, %s994_s6  ;;  %p1000_p5 = scmp.lt.s32.totalorder %s994_s6, %s994_s6 }
   0xe   :  { %p1001_p6 = por %p1000_p5, %p999_p4 }
  0x10   :  { %p1002_p7 = pnand %p1001_p6, %p995_p3 }
  0x12   :  { %1005 = shalt.err (!%p1002_p7)
}
  0x13   :  { %s1033_s12 = smov 256   ;;  %s1034_s13 = smov 16  }
  0x14   :  { %29 = dma.hbm_to_vmem [thread:$0]  %s1128_s1, 1024, %s24_s27, [#allocation4], %s1033_s12, %s1033_s12, %s1034_s13  }
  0x15   :  { %s1035_s16 = smov [#allocation5]   ;;  %s1006_s20 = scalar_lea.hbm %s1130_s3, 8192 }
  0x16   :  { %s37_s17 = sshll.u32 %s1035_s16, 4  ;;  %p1007_p8 = scmp.ne.s32.totalorder %s1130_s3, %s1006_s20  ;;  %s38_s17 = int_to_ptr.vmem [resolvable:$true] %s37_s17 }
  0x17   :  { %p1010_p9 = scmp.lt.u32.totalorder %s1006_s20, %s1130_s3 }
  0x19   :  { %p1012_p10 = pnand %p1010_p9, %p1007_p8 }
  0x1b   :  { %1015 = shalt.err (!%p1012_p10)
}
  0x1c   :  { %s1016_s25 = scalar_lea.vmem %s38_s17, 8192  ;;  %p1021_p12 = scmp.lt.s32.totalorder %s38_s17, %s38_s17 }
  0x1d   :  { %p1017_p11 = scmp.ne.s32.totalorder %s38_s17, %s1016_s25  ;;  %p1022_p13 = scmp.lt.s32.totalorder %s1016_s25, %s1016_s25 }
  0x1f   :  { %p1023_p0 = por %p1022_p13, %p1021_p12 }
  0x21   :  { %p1024_p1 = pnand %p1023_p0, %p1017_p11 }
  0x23   :  { %1027 = shalt.err (!%p1024_p1)
}
  0x24   :  { %s1036_s1 = smov 128   ;;  %s1037_s26 = smov 8  }
  0x25   :  { %43 = dma.hbm_to_vmem [thread:$0]  %s1130_s3, 8192, %s38_s17, [#allocation6], %s1036_s1, %s1036_s1, %s1037_s26  }
  0x26   :  { %1028 = dma.done.wait [#allocation4], 1024  }
  0x27   :  { %1029 = vsyncadd [#allocation4], 4294966272 }
  0x28   :  { %1030 = dma.done.wait [#allocation6], 8192  }
  0x29   :  { %1031 = vsyncadd [#allocation6], 4294959104  ;;  %v1038_v1 = vmov 0   ;;  %v876_v2 = vld [vmem:[#allocation3 + $0x4] ss:$16 sps:$4 sm:$0xff]   ;;  %vm128_vm0 = vcmask 261120  }
  0x2a   :  { %164 = vmatprep.mubr.bf16.mxu0 %v1038_v1  ;;  %205 = vmatprep.mubr.bf16.mxu1 %v1038_v1  ;;  %v878_v3 = vld [vmem:[#allocation3 + $0xc] ss:$16 sps:$4 sm:$0xff]   ;;  %v880_v4 = vld [vmem:[#allocation3] ss:$16 sps:$4 sm:$0xff]   ;;  %v881_v5 = vld [vmem:[#allocation3 + $0x8] ss:$16 sps:$4 sm:$0xff]  }
  0x2b   :  { %875 = vset.pattern.permute.xlu0 %v1038_v1  ;;  %132 = vmatprep.subr.bf16.mxu0 %v876_v2  ;;  %v882_v6 = vld [vmem:[#allocation3 + $0x24] ss:$16 sps:$4 sm:$0xff]   ;;  %v884_v7 = vld [vmem:[#allocation3 + $0x2c] ss:$16 sps:$4 sm:$0xff]   ;;  %v886_v8 = vld [vmem:[#allocation3 + $0x20] ss:$16 sps:$4 sm:$0xff]  }
  0x2c   :  { %173 = vmatprep.subr.bf16.mxu1 %v878_v3  ;;  %133 = vmatpush1.bf16.msra.mxu0 %v880_v4  ;;  %v887_v9 = vld [vmem:[#allocation3 + $0x28] ss:$16 sps:$4 sm:$0xff]   ;;  %v57_v10 = vld [vmem:[%s1127_s0] sm:$0xf]  ;;  %v890_v12 = vld [vmem:[#allocation5 + $0x4] ss:$8 sps:$4 sm:$0xff]  }
  0x2d   :  { %174 = vmatpush1.bf16.msra.mxu1 %v881_v5  ;;  %134 = vmatprep.subr.bf16.mxu0 %v882_v6  ;;  %v888_v11 = vld [vmem:[#allocation5] ss:$8 sps:$4 sm:$0xff]   ;;  %v893_v14 = vld [vmem:[#allocation5 + $0x104] ss:$8 sps:$4 sm:$0xff]   ;;  %v896_v15 = vld [vmem:[#allocation5 + $0x14] ss:$8 sps:$4 sm:$0xff]  }
  0x2e   :  { %175 = vmatprep.subr.bf16.mxu1 %v884_v7  ;;  %v891_v13 = vld [vmem:[#allocation5 + $0x100] ss:$8 sps:$4 sm:$0xff]   ;;  %v899_v16 = vld [vmem:[#allocation5 + $0x114] ss:$8 sps:$4 sm:$0xff]   ;;  %v894_v17 = vld [vmem:[#allocation5 + $0x10] ss:$8 sps:$4 sm:$0xff]  }
  0x2f   :  { %v897_v18 = vld [vmem:[#allocation5 + $0x110] ss:$8 sps:$4 sm:$0xff]   ;;  %v902_v19 = vld [vmem:[#allocation5 + $0x24] ss:$8 sps:$4 sm:$0xff]   ;;  %v900_v21 = vld [vmem:[#allocation5 + $0x20] ss:$8 sps:$4 sm:$0xff]  }
  0x30   :  { %135 = vmatpush1.bf16.msra.mxu0 %v886_v8  ;;  %v905_v20 = vld [vmem:[#allocation5 + $0x124] ss:$8 sps:$4 sm:$0xff]   ;;  %v903_v22 = vld [vmem:[#allocation5 + $0x120] ss:$8 sps:$4 sm:$0xff]   ;;  %v908_v23 = vld [vmem:[#allocation5 + $0x34] ss:$8 sps:$4 sm:$0xff]  }
  0x31   :  { %176 = vmatpush1.bf16.msra.mxu1 %v887_v9  ;;  %659 = vmatprep.subr.bf16.mxu0 %v893_v14  ;;  %v911_v24 = vld [vmem:[#allocation5 + $0x134] ss:$8 sps:$4 sm:$0xff]   ;;  %v906_v25 = vld [vmem:[#allocation5 + $0x30] ss:$8 sps:$4 sm:$0xff]   ;;  %v914_v27 = vld [vmem:[#allocation5 + $0x44] ss:$8 sps:$4 sm:$0xff]  }
  0x32   :  { %618 = vmatprep.subr.bf16.mxu1 %v890_v12  ;;  %v909_v26 = vld [vmem:[#allocation5 + $0x130] ss:$8 sps:$4 sm:$0xff]   ;;  %v917_v28 = vld [vmem:[#allocation5 + $0x144] ss:$8 sps:$4 sm:$0xff]   ;;  %v912_v29 = vld [vmem:[#allocation5 + $0x40] ss:$8 sps:$4 sm:$0xff]  }
  0x33   :  { %796 = vmatmul.mubr.msk.bf16.vlgmr.msra.gmra.mrb[0].mxu0 %vm128_vm0, %v57_v10  ;;  %v915_v30 = vld [vmem:[#allocation5 + $0x140] ss:$8 sps:$4 sm:$0xff]   ;;  %v920_v31 = vld [vmem:[#allocation5 + $0x54] ss:$8 sps:$4 sm:$0xff]   ;;  %v918_v33 = vld [vmem:[#allocation5 + $0x50] ss:$8 sps:$4 sm:$0xff]  }
  0x34   :  { %797 = vmatmul.mubr.msk.bf16.vlgmr.msra.gmra.mrb[0].mxu1 %vm128_vm0, %v57_v10  ;;  %660 = vmatpush1.bf16.msra.mxu0 %v891_v13  ;;  %v923_v32 = vld [vmem:[#allocation5 + $0x154] ss:$8 sps:$4 sm:$0xff]   ;;  %v921_v34 = vld [vmem:[#allocation5 + $0x150] ss:$8 sps:$4 sm:$0xff]   ;;  %v926_v35 = vld [vmem:[#allocation5 + $0x64] ss:$8 sps:$4 sm:$0xff]  }
  0x35   :  { %619 = vmatpush1.bf16.msra.mxu1 %v888_v11  ;;  %661 = vmatprep.subr.bf16.mxu0 %v899_v16  ;;  %v929_v36 = vld [vmem:[#allocation5 + $0x164] ss:$8 sps:$4 sm:$0xff]   ;;  %v924_v37 = vld [vmem:[#allocation5 + $0x60] ss:$8 sps:$4 sm:$0xff]   ;;  %v932_v39 = vld [vmem:[#allocation5 + $0x74] ss:$8 sps:$4 sm:$0xff]   ;;  %v68_v11 = vlaneseq }
  0x36   :  { %620 = vmatprep.subr.bf16.mxu1 %v896_v15  ;;  %v927_v38 = vld [vmem:[#allocation5 + $0x160] ss:$8 sps:$4 sm:$0xff]   ;;  %v935_v40 = vld [vmem:[#allocation5 + $0x174] ss:$8 sps:$4 sm:$0xff]   ;;  %v930_v41 = vld [vmem:[#allocation5 + $0x70] ss:$8 sps:$4 sm:$0xff]  }
  0x37   :  { %v933_v42 = vld [vmem:[#allocation5 + $0x170] ss:$8 sps:$4 sm:$0xff]   ;;  %v938_v43 = vld [vmem:[#allocation5 + $0x84] ss:$8 sps:$4 sm:$0xff]   ;;  %v936_v45 = vld [vmem:[#allocation5 + $0x80] ss:$8 sps:$4 sm:$0xff]  }
  0x38   :  { %662 = vmatpush1.bf16.msra.mxu0 %v897_v18  ;;  %v941_v44 = vld [vmem:[#allocation5 + $0x184] ss:$8 sps:$4 sm:$0xff]   ;;  %v939_v46 = vld [vmem:[#allocation5 + $0x180] ss:$8 sps:$4 sm:$0xff]   ;;  %v944_v47 = vld [vmem:[#allocation5 + $0x94] ss:$8 sps:$4 sm:$0xff]  }
  0x39   :  { %621 = vmatpush1.bf16.msra.mxu1 %v894_v17  ;;  %663 = vmatprep.subr.bf16.mxu0 %v905_v20  ;;  %v947_v48 = vld [vmem:[#allocation5 + $0x194] ss:$8 sps:$4 sm:$0xff]   ;;  %v942_v49 = vld [vmem:[#allocation5 + $0x90] ss:$8 sps:$4 sm:$0xff]   ;;  %v950_v51 = vld [vmem:[#allocation5 + $0xa4] ss:$8 sps:$4 sm:$0xff]  }
  0x3a   :  { %622 = vmatprep.subr.bf16.mxu1 %v902_v19  ;;  %v945_v50 = vld [vmem:[#allocation5 + $0x190] ss:$8 sps:$4 sm:$0xff]   ;;  %v953_v52 = vld [vmem:[#allocation5 + $0x1a4] ss:$8 sps:$4 sm:$0xff]   ;;  %v948_v53 = vld [vmem:[#allocation5 + $0xa0] ss:$8 sps:$4 sm:$0xff]  }
  0x3b   :  { %v951_v54 = vld [vmem:[#allocation5 + $0x1a0] ss:$8 sps:$4 sm:$0xff]   ;;  %v956_v55 = vld [vmem:[#allocation5 + $0xb4] ss:$8 sps:$4 sm:$0xff]   ;;  %v954_v57 = vld [vmem:[#allocation5 + $0xb0] ss:$8 sps:$4 sm:$0xff]  }
  0x3c   :  { %664 = vmatpush1.bf16.msra.mxu0 %v903_v22  ;;  %v959_v56 = vld [vmem:[#allocation5 + $0x1b4] ss:$8 sps:$4 sm:$0xff]   ;;  %v957_v58 = vld [vmem:[#allocation5 + $0x1b0] ss:$8 sps:$4 sm:$0xff]   ;;  %v962_v59 = vld [vmem:[#allocation5 + $0xc4] ss:$8 sps:$4 sm:$0xff]  }
  0x3d   :  { %623 = vmatpush1.bf16.msra.mxu1 %v900_v21  ;;  %665 = vmatprep.subr.bf16.mxu0 %v911_v24  ;;  %v965_v60 = vld [vmem:[#allocation5 + $0x1c4] ss:$8 sps:$4 sm:$0xff]   ;;  %v960_v61 = vld [vmem:[#allocation5 + $0xc0] ss:$8 sps:$4 sm:$0xff]   ;;  %v968_v63 = vld [vmem:[#allocation5 + $0xd4] ss:$8 sps:$4 sm:$0xff]  }
  0x3e   :  { %624 = vmatprep.subr.bf16.mxu1 %v908_v23  ;;  %v963_v62 = vld [vmem:[#allocation5 + $0x1c0] ss:$8 sps:$4 sm:$0xff]   ;;  %v971_v0 = vld [vmem:[#allocation5 + $0x1d4] ss:$8 sps:$4 sm:$0xff]   ;;  %v966_v1 = vld [vmem:[#allocation5 + $0xd0] ss:$8 sps:$4 sm:$0xff]  }
  0x3f   :  { %v969_v2 = vld [vmem:[#allocation5 + $0x1d0] ss:$8 sps:$4 sm:$0xff]   ;;  %v974_v3 = vld [vmem:[#allocation5 + $0xe4] ss:$8 sps:$4 sm:$0xff]   ;;  %v972_v5 = vld [vmem:[#allocation5 + $0xe0] ss:$8 sps:$4 sm:$0xff]  }
  0x40   :  { %666 = vmatpush1.bf16.msra.mxu0 %v909_v26  ;;  %v977_v4 = vld [vmem:[#allocation5 + $0x1e4] ss:$8 sps:$4 sm:$0xff]   ;;  %v975_v6 = vld [vmem:[#allocation5 + $0x1e0] ss:$8 sps:$4 sm:$0xff]   ;;  %v980_v7 = vld [vmem:[#allocation5 + $0xf4] ss:$8 sps:$4 sm:$0xff]  }
  0x41   :  { %625 = vmatpush1.bf16.msra.mxu1 %v906_v25  ;;  %667 = vmatprep.subr.bf16.mxu0 %v917_v28  ;;  %v983_v8 = vld [vmem:[#allocation5 + $0x1f4] ss:$8 sps:$4 sm:$0xff]   ;;  %v978_v9 = vld [vmem:[#allocation5 + $0xf0] ss:$8 sps:$4 sm:$0xff]   ;;  %v69_v12 = vshrl.u32 %v68_v11, 7  ;;  %vm780_vm1 = vcmask 57344  }
  0x42   :  { %626 = vmatprep.subr.bf16.mxu1 %v914_v27  ;;  %v981_v10 = vld [vmem:[#allocation5 + $0x1f0] ss:$8 sps:$4 sm:$0xff]   ;;  %v66_v15 = vld [vmem:[%s1129_s2] sm:$0xf] }
  0x43   :  { %v1110_v13 = vsub.s32 0, %v69_v12  ;;  %v78_v14 = vsub.s32 2, %v69_v12  ;;  %v74_v16 = vsub.s32 1, %v69_v12  ;;  %v82_v17 = vsub.s32 3, %v69_v12 }
  0x44   :  { %668 = vmatpush1.bf16.msra.mxu0 %v915_v30 }
  0x45   :  { %627 = vmatpush1.bf16.msra.mxu1 %v912_v29  ;;  %669 = vmatprep.subr.bf16.mxu0 %v923_v32  ;;  %v71_v18 = vrot.slane %v66_v15, %v1110_v13  ;;  %v79_v19 = vrot.slane %v66_v15, %v78_v14  ;;  %v75_v20 = vrot.slane %v66_v15, %v74_v16 }
  0x46   :  { %628 = vmatprep.subr.bf16.mxu1 %v920_v31  ;;  %v83_v21 = vrot.slane %v66_v15, %v82_v17 }
  0x48   :  { %670 = vmatpush1.bf16.msra.mxu0 %v921_v34 }
  0x49   :  { %629 = vmatpush1.bf16.msra.mxu1 %v918_v33  ;;  %671 = vmatprep.subr.bf16.mxu0 %v929_v36 }
  0x4a   :  { %630 = vmatprep.subr.bf16.mxu1 %v926_v35 }
  0x4c   :  { %672 = vmatpush1.bf16.msra.mxu0 %v927_v38 }
  0x4d   :  { %631 = vmatpush1.bf16.msra.mxu1 %v924_v37  ;;  %673 = vmatprep.subr.bf16.mxu0 %v935_v40 }
  0x4e   :  { %632 = vmatprep.subr.bf16.mxu1 %v932_v39 }
  0x50   :  { %674 = vmatpush1.bf16.msra.mxu0 %v933_v42  ;;  %v1039_v42 = vmov 1966171168  }
  0x51   :  { %633 = vmatpush1.bf16.msra.mxu1 %v930_v41  ;;  %675 = vmatprep.subr.bf16.mxu0 %v941_v44  ;;  %v862_v44 = vld.sshfl [vmem:[%s1132_s5] sm:$0x11 pattern:$0x75316420] }
  0x52   :  { %634 = vmatprep.subr.bf16.mxu1 %v938_v43  ;;  %v725_v43 = vunpack.c.l.s4 %v1039_v42 }
  0x54   :  { %676 = vmatpush1.bf16.msra.mxu0 %v939_v46  ;;  %v723_v46 = vcombine.high %v862_v44, %v862_v44 }
  0x55   :  { %635 = vmatpush1.bf16.msra.mxu1 %v936_v45  ;;  %677 = vmatprep.subr.bf16.mxu0 %v947_v48  ;;  %v726_v45 = vunpack.c.0.s8 %v725_v43 }
  0x56   :  { %636 = vmatprep.subr.bf16.mxu1 %v944_v47 }
  0x57   :  { %v729_v47 = vsub.s32 %v726_v45, %v69_v12 }
  0x58   :  { %678 = vmatpush1.bf16.msra.mxu0 %v945_v50  ;;  %v705_v50 = vld [vmem:[#allocation2] sm:$0x1] }
  0x59   :  { %637 = vmatpush1.bf16.msra.mxu1 %v942_v49  ;;  %679 = vmatprep.subr.bf16.mxu0 %v953_v52  ;;  %v737_v48 = vrot.slane %v723_v46, %v729_v47  ;;  %v730_v49 = vrot.slane %v862_v44, %v729_v47 }
  0x5a   :  { %638 = vmatprep.subr.bf16.mxu1 %v950_v51  ;;  %708 = vperm.xlu0 %875, %v705_v50   ;;  %v286_v51 = vld [vmem:[%s1131_s4] sm:$0x3] }
  0x5b   :  { %v291_v52 = vrot.slane %v286_v51, %v1110_v13 }
  0x5c   :  { %680 = vmatpush1.bf16.msra.mxu0 %v951_v54 }
  0x5d   :  { %639 = vmatpush1.bf16.msra.mxu1 %v948_v53  ;;  %681 = vmatprep.subr.bf16.mxu0 %v959_v56  ;;  %v295_v53 = vrot.slane %v286_v51, %v74_v16 }
  0x5e   :  { %640 = vmatprep.subr.bf16.mxu1 %v956_v55 }
  0x60   :  { %682 = vmatpush1.bf16.msra.mxu0 %v957_v58 }
  0x61   :  { %641 = vmatpush1.bf16.msra.mxu1 %v954_v57  ;;  %683 = vmatprep.subr.bf16.mxu0 %v965_v60 }
  0x62   :  { %642 = vmatprep.subr.bf16.mxu1 %v962_v59 }
  0x64   :  { %684 = vmatpush1.bf16.msra.mxu0 %v963_v62 }
  0x65   :  { %643 = vmatpush1.bf16.msra.mxu1 %v960_v61  ;;  %685 = vmatprep.subr.bf16.mxu0 %v971_v0 }
  0x66   :  { %644 = vmatprep.subr.bf16.mxu1 %v968_v63 }
  0x68   :  { %686 = vmatpush1.bf16.msra.mxu0 %v969_v2 }
  0x69   :  { %645 = vmatpush1.bf16.msra.mxu1 %v966_v1  ;;  %687 = vmatprep.subr.bf16.mxu0 %v977_v4 }
  0x6a   :  { %646 = vmatprep.subr.bf16.mxu1 %v974_v3 }
  0x6c   :  { %688 = vmatpush1.bf16.msra.mxu0 %v975_v6 }
  0x6d   :  { %647 = vmatpush1.bf16.msra.mxu1 %v972_v5  ;;  %689 = vmatprep.subr.bf16.mxu0 %v983_v8 }
  0x6e   :  { %648 = vmatprep.subr.bf16.mxu1 %v980_v7 }
  0x70   :  { %690 = vmatpush1.bf16.msra.mxu0 %v981_v10 }
  0x71   :  { %649 = vmatpush1.bf16.msra.mxu1 %v978_v9 }
  0xd9   :  { %v709_v6 = vpop.permute.xlu0 %708 }
  0xda   :  { %v714_v7 = vrot.slane %v709_v6, %v1110_v13 }
 0x106   :  { %v166_v22 = vpop.f32.mrb[0].mxu0 }
 0x107   :  { %v207_v23 = vpop.f32.mrb[0].mxu1  ;;  %v167_v24 = vadd.f32 %v166_v22, %v71_v18  ;;  %v168_v26 = vpop.f32.mrb[1].mxu0 }
 0x108   :  { %v208_v25 = vadd.f32 %v207_v23, %v79_v19  ;;  %v209_v27 = vpop.f32.mrb[1].mxu1  ;;  %v169_v28 = vadd.f32 %v168_v26, %v75_v20  ;;  %v170_v30 = vpop.f32.mrb[2].mxu0 }
 0x109   :  { %v210_v29 = vadd.f32 %v209_v27, %v83_v21  ;;  %v211_v31 = vpop.f32.mrb[2].mxu1  ;;  %v214_v32 = vmax.f32 %v167_v24, 0.0  ;;  %v171_v34 = vpop.f32.mrb[3].mxu0 }
 0x10a   :  { %v216_v33 = vmax.f32 %v208_v25, 0.0  ;;  %v212_v35 = vpop.f32.mrb[3].mxu1  ;;  %v215_v36 = vmax.f32 %v169_v28, 0.0 }
 0x10b   :  { %v217_v37 = vmax.f32 %v210_v29, 0.0  ;;  %v218_v41 = vpack.c.bf16 %v214_v32, %v214_v32 }
 0x10c   :  { %v220_v38 = vpack.c.bf16 %v216_v33, %v216_v33  ;;  %v219_v39 = vpack.c.bf16 %v215_v36, %v215_v36 }
 0x10d   :  { %v221_v40 = vpack.c.bf16 %v217_v37, %v217_v37 }
 0x10e   :  { %650 = vmatprep.mubr.bf16.mxu1 %v219_v39 }
 0x10f   :  { %691 = vmatprep.mubr.bf16.mxu0 %v221_v40  ;;  %651 = vmatmul.mubr.bf16.vlgmr.msra.gmra.mrb[4].mxu1 %v218_v41 }
 0x110   :  { %692 = vmatmul.mubr.bf16.vlgmr.msra.gmra.mrb[4].mxu0 %v220_v38  ;;  %772 = vmatprep.mubr.bf16.mxu1 %v737_v48 }
 0x1e2   :  { %v652_v54 = vpop.f32.mrb[4].mxu1 }
 0x1e3   :  { %v693_v55 = vpop.f32.mrb[4].mxu0  ;;  %v653_v56 = vadd.f32 %v652_v54, %v291_v52  ;;  %v654_v57 = vpop.f32.mrb[5].mxu1 }
 0x1e4   :  { %v695_v58 = vpop.f32.mrb[5].mxu0  ;;  %v655_v59 = vadd.f32 %v654_v57, %v295_v53  ;;  %v656_v60 = vpop.f32.mrb[6].mxu1 }
 0x1e5   :  { %v697_v61 = vpop.f32.mrb[6].mxu0  ;;  %v694_v62 = vadd.f32 %v693_v55, %v653_v56  ;;  %v657_v63 = vpop.f32.mrb[7].mxu1 }
 0x1e6   :  { %v698_v0 = vpop.f32.mrb[7].mxu0  ;;  %v696_v1 = vadd.f32 %v695_v58, %v655_v59 }
 0x1e7   :  { %v700_v2 = vmax.f32 %v694_v62, 0.0 }
 0x1e8   :  { %v701_v3 = vmax.f32 %v696_v1, 0.0 }
 0x1e9   :  { %v703_v5 = vpack.c.bf16 %v700_v2, %v700_v2 }
 0x1ea   :  { %v704_v4 = vpack.c.bf16 %v701_v3, %v701_v3 }
 0x1ec   :  { %740 = vmatprep.subr.bf16.mxu1 %v704_v4 }
 0x1ed   :  { %741 = vmatpush1.bf16.xpose.msra.mxu1 %v703_v5 }
 0x1f4   :  { %773 = vmatmul.mubr.bf16.vlgmr.msra.gmra.mrb[8].mxu1 %v730_v49 }
 0x2c7   :  { %v774_v8 = vpop.f32.mrb[8].mxu1 }
 0x2c8   :  { %v775_v9 = vadd.f32 %v774_v8, %v714_v7  ;;  %v776_v10 = vpop.f32.mrb[9].mxu1 }
 0x2c9   :  { %v777_v11 = vpop.f32.mrb[10].mxu1 }
 0x2ca   :  { %781 = vst.msk [vmem:[%s1134_s7] sm:$0x1] %vm780_vm1, %v775_v9  ;;  %v778_v12 = vpop.f32.mrb[11].mxu1 }
 0x2cb   :  { %786 = vsyncpa [#allocation4], 1 }
 0x2cc   :  { %787 = vsyncpa [#allocation6], 1 }

</bundles_post_ra>
